<compile_context>
chip_gen: v7x
topology: tpu7x:2x2x1
jax: 0.10.0
libtpu: 0.0.40
codegen_flags: <defaults>
</compile_context>

<pallas_src>
import jax
import jax.numpy as jnp
from jax.experimental import pallas as pl
from jax.experimental.pallas import tpu as pltpu

LAYER_NORM_EPS = 1e-12  # BERT default config.layer_norm_eps


def _bert_output_kernel(h_ref, w_ref, b_ref, x_ref, gamma_ref, beta_ref, o_ref):
    # h_ref: (tm, K) f32     w_ref: (K, N) bf16 (VMEM-resident, constant index)
    # b_ref/gamma_ref/beta_ref: (1, N) f32      x_ref/o_ref: (tm, N)
    # Dense projection: cast the activation tile to bf16 in-kernel (VPU op,
    # hidden under the MXU), accumulate in f32 on the MXU.
    y = jnp.dot(h_ref[...].astype(jnp.bfloat16), w_ref[...],
                preferred_element_type=jnp.float32)

    # bias + (dropout == identity at inference) + residual add, all in f32.
    # TODO(synk): training-mode dropout (pltpu.prng_random_bits) not implemented.
    y = y + b_ref[...] + x_ref[...].astype(jnp.float32)

    # LayerNorm over the last (hidden) axis, in f32.
    mean = jnp.mean(y, axis=-1, keepdims=True)
    centered = y - mean
    var = jnp.mean(centered * centered, axis=-1, keepdims=True)
    inv = jax.lax.rsqrt(var + LAYER_NORM_EPS)
    y = centered * inv * gamma_ref[...] + beta_ref[...]

    o_ref[...] = y.astype(o_ref.dtype)


def _pick_row_tile(m, preferred=512):
    """Row tile: multiple of 128 (MXU/sublane dense), <= preferred, dividing m.
    Keeps at least two row tiles for larger m so the 'parallel' axis can shard
    across TensorCores.  Small m (or awkward m) falls back to a full-row block,
    which is always a legal block shape."""
    if m < 256:
        return m
    cap = min(preferred, max(128, (m // 2 // 128) * 128))
    t = cap
    while t >= 128:
        if m % t == 0:
            return t
        t -= 128
    return m


def bert_output(hidden_states, input_tensor, w, b, gamma, beta, *,
                tm=None, out_dtype=None):
    """hidden_states: [M, K], input_tensor: [M, N], w: [K, N] (pre-cast to bf16
    at model-load time preferred), b/gamma/beta: [N]."""
    M, K = hidden_states.shape
    N = input_tensor.shape[-1]

    if tm is None:
        tm = _pick_row_tile(M)
    assert M % tm == 0, "row count must be divisible by row tile"

    # Weight should already be bf16 (converted once at load time); cast only as
    # a fallback so the wrapper stays robust.
    w_bf = w if w.dtype == jnp.bfloat16 else w.astype(jnp.bfloat16)

    # Keep 1-D params as (1, N) so BlockSpecs map cleanly onto (sublane, lane).
    b2 = b.reshape(1, N).astype(jnp.float32)
    g2 = gamma.reshape(1, N).astype(jnp.float32)
    be2 = beta.reshape(1, N).astype(jnp.float32)

    if out_dtype is None:
        out_dtype = input_tensor.dtype
    itemsize_h = jnp.dtype(hidden_states.dtype).itemsize
    itemsize_x = jnp.dtype(input_tensor.dtype).itemsize
    itemsize_o = jnp.dtype(out_dtype).itemsize

    # Weight is read from HBM exactly once (constant block index).
    cost = pl.CostEstimate(
        flops=2 * M * K * N,
        transcendentals=M,  # one rsqrt per row
        bytes_accessed=(M * K * itemsize_h          # activations
                        + K * N * 2                 # bf16 weight, once
                        + M * N * itemsize_x        # residual
                        + M * N * itemsize_o        # output
                        + 3 * N * 4),               # bias, gamma, beta
    )

    # VMEM budget derived from actual tile footprint (+ epilogue headroom).
    vmem_need = (2 * tm * K * itemsize_h        # activation tiles (double-buffered)
                 + 2 * K * N * 2                # resident bf16 weight (dbl-buffered)
                 + 2 * tm * N * itemsize_x      # residual tiles
                 + 2 * tm * N * itemsize_o      # output tiles
                 + 6 * N * 4                    # bias/gamma/beta
                 + 4 * tm * N * 4)              # f32 epilogue temporaries
    vmem_limit = int(min(max(vmem_need * 5 // 4, 16 * 1024 * 1024),
                         128 * 1024 * 1024))

    grid = (M // tm,)
    return pl.pallas_call(
        _bert_output_kernel,
        out_shape=jax.ShapeDtypeStruct((M, N), out_dtype),
        grid_spec=pltpu.PrefetchScalarGridSpec(
            num_scalar_prefetch=0,
            grid=grid,
            in_specs=[
                pl.BlockSpec((tm, K), lambda i: (i, 0)),  # activations row tile
                pl.BlockSpec((K, N), lambda i: (0, 0)),   # resident dense weight
                pl.BlockSpec((1, N), lambda i: (0, 0)),   # dense bias
                pl.BlockSpec((tm, N), lambda i: (i, 0)),  # residual input tile
                pl.BlockSpec((1, N), lambda i: (0, 0)),   # LN gamma
                pl.BlockSpec((1, N), lambda i: (0, 0)),   # LN beta
            ],
            out_specs=pl.BlockSpec((tm, N), lambda i: (i, 0)),
        ),
        compiler_params=pltpu.CompilerParams(
            dimension_semantics=("parallel",),
            vmem_limit_bytes=vmem_limit,
        ),
        cost_estimate=cost,
    )(hidden_states, w_bf, b2, input_tensor, g2, be2)


def _reference(hidden_states, input_tensor, w, b, gamma, beta):
    y = hidden_states.astype(jnp.float32) @ w.astype(jnp.float32) + b
    y = y + input_tensor.astype(jnp.float32)
    mean = jnp.mean(y, axis=-1, keepdims=True)
    var = jnp.mean((y - mean) ** 2, axis=-1, keepdims=True)
    y = (y - mean) * jax.lax.rsqrt(var + LAYER_NORM_EPS)
    return y * gamma + beta


if __name__ == "__main__":
    # Small BERT-ish config: batch=2, seq=8, hidden=32, intermediate=128.
    batch, seq = 2, 8
    hidden_size, intermediate_size = 32, 128
    M = batch * seq

    key = jax.random.PRNGKey(0)
    k1, k2, k3, k4, k5, k6 = jax.random.split(key, 6)

    hidden_states = jax.random.normal(k1, (M, intermediate_size), jnp.float32)
    input_tensor = jax.random.normal(k2, (M, hidden_size), jnp.float32)

    # Deterministic "Linear" params (weight stored transposed: [in, out]).
    w = jax.random.normal(k3, (intermediate_size, hidden_size), jnp.float32) * 0.02
    b = jax.random.normal(k4, (hidden_size,), jnp.float32) * 0.02
    # LayerNorm params (init like nn.LayerNorm but perturbed deterministically).
    gamma = 1.0 + 0.01 * jax.random.normal(k5, (hidden_size,), jnp.float32)
    beta = 0.01 * jax.random.normal(k6, (hidden_size,), jnp.float32)

    # "Model-load time" weight conversion to bf16 (done once, outside the call).
    w_bf16 = w.astype(jnp.bfloat16)

    out = bert_output(hidden_states, input_tensor, w_bf16, b, gamma, beta)
    out = jax.block_until_ready(out)

    ref = _reference(hidden_states, input_tensor, w, b, gamma, beta)
    assert out.shape == (M, hidden_size)
    # bf16 matmul operands -> looser tolerance vs the f32 reference.
    assert jnp.allclose(out, ref, atol=2e-2, rtol=2e-2), "mismatch vs reference"

    # Second check: exercise multiple row tiles (M=256 -> tm=128 -> 2 grid steps).
    M2 = 256
    h2 = jax.random.normal(k1, (M2, intermediate_size), jnp.float32)
    x2 = jax.random.normal(k2, (M2, hidden_size), jnp.float32)
    out2 = bert_output(h2, x2, w_bf16, b, gamma, beta)
    out2 = jax.block_until_ready(out2)
    ref2 = _reference(h2, x2, w, b, gamma, beta)
    assert out2.shape == (M2, hidden_size)
    assert jnp.allclose(out2, ref2, atol=2e-2, rtol=2e-2), "mismatch vs reference (tiled)"

    print("KERNEL_OK")
</pallas_src>

<mosaic_0001>
module attributes {stable_mosaic.version = 11 : i64} {
  func.func @_bert_output_kernel(%arg0: i32, %arg1: memref<16x128xf32, #tpu.memory_space<vmem>>, %arg2: memref<128x32xbf16, #tpu.memory_space<vmem>>, %arg3: memref<1x32xf32, #tpu.memory_space<vmem>>, %arg4: memref<16x32xf32, #tpu.memory_space<vmem>>, %arg5: memref<1x32xf32, #tpu.memory_space<vmem>>, %arg6: memref<1x32xf32, #tpu.memory_space<vmem>>, %arg7: memref<16x32xf32, #tpu.memory_space<vmem>>) attributes {dimension_semantics = [#tpu.dimension_semantics<parallel>], iteration_bounds = array<i64: 1>, scalar_prefetch = 0 : i64, scratch_operands = 0 : i64, tpu.core_type = #tpu.core_type<tc>, window_params = [{transform_indices = @transform_0, window_bounds = array<i64: 16, 128>}, {pipeline_mode = #tpu.pipeline_mode<synchronous>, transform_indices = @transform_1, window_bounds = array<i64: 128, 32>}, {pipeline_mode = #tpu.pipeline_mode<synchronous>, transform_indices = @transform_2, window_bounds = array<i64: 1, 32>}, {transform_indices = @transform_3, window_bounds = array<i64: 16, 32>}, {pipeline_mode = #tpu.pipeline_mode<synchronous>, transform_indices = @transform_4, window_bounds = array<i64: 1, 32>}, {pipeline_mode = #tpu.pipeline_mode<synchronous>, transform_indices = @transform_5, window_bounds = array<i64: 1, 32>}, {transform_indices = @transform_6, window_bounds = array<i64: 16, 32>}]} {
    %c0 = arith.constant 0 : index
    %c0_0 = arith.constant 0 : index
    %0 = vector.load %arg1[%c0, %c0_0] : memref<16x128xf32, #tpu.memory_space<vmem>>, vector<16x128xf32>
    %1 = arith.truncf %0 : vector<16x128xf32> to vector<16x128xbf16>
    %c0_1 = arith.constant 0 : index
    %c0_2 = arith.constant 0 : index
    %2 = vector.load %arg2[%c0_1, %c0_2] : memref<128x32xbf16, #tpu.memory_space<vmem>>, vector<128x32xbf16>
    %cst = arith.constant dense<0.000000e+00> : vector<16x32xf32>
    %3 = tpu.matmul %1, %2, %cst {dimension_numbers = #tpu.dot_dimension_numbers<[1], [0], [0], [1], [0, 0, 1, 1], [], []>} : vector<16x128xbf16>, vector<128x32xbf16>, vector<16x32xf32> -> vector<16x32xf32>
    %c0_3 = arith.constant 0 : index
    %c0_4 = arith.constant 0 : index
    %4 = vector.load %arg3[%c0_3, %c0_4] : memref<1x32xf32, #tpu.memory_space<vmem>>, vector<1x32xf32>
    %5 = vector.broadcast %4 : vector<1x32xf32> to vector<16x32xf32>
    %6 = arith.addf %3, %5 : vector<16x32xf32>
    %c0_5 = arith.constant 0 : index
    %c0_6 = arith.constant 0 : index
    %7 = vector.load %arg4[%c0_5, %c0_6] : memref<16x32xf32, #tpu.memory_space<vmem>>, vector<16x32xf32>
    %8 = arith.addf %6, %7 : vector<16x32xf32>
    %cst_7 = arith.constant dense<0.000000e+00> : vector<16xf32>
    %9 = vector.multi_reduction <add>, %8, %cst_7 [1] : vector<16x32xf32> to vector<16xf32>
    %10 = vector.shape_cast %9 : vector<16xf32> to vector<16x1xf32>
    %cst_8 = arith.constant 3.200000e+01 : f32
    %11 = vector.broadcast %cst_8 : f32 to vector<16x1xf32>
    %12 = arith.divf %10, %11 : vector<16x1xf32>
    %13 = vector.broadcast %12 : vector<16x1xf32> to vector<16x32xf32>
    %14 = arith.subf %8, %13 : vector<16x32xf32>
    %15 = arith.mulf %14, %14 : vector<16x32xf32>
    %cst_9 = arith.constant dense<0.000000e+00> : vector<16xf32>
    %16 = vector.multi_reduction <add>, %15, %cst_9 [1] : vector<16x32xf32> to vector<16xf32>
    %17 = vector.shape_cast %16 : vector<16xf32> to vector<16x1xf32>
    %cst_10 = arith.constant 3.200000e+01 : f32
    %18 = vector.broadcast %cst_10 : f32 to vector<16x1xf32>
    %19 = arith.divf %17, %18 : vector<16x1xf32>
    %cst_11 = arith.constant 9.99999996E-13 : f32
    %20 = vector.broadcast %cst_11 : f32 to vector<16x1xf32>
    %21 = arith.addf %19, %20 : vector<16x1xf32>
    %22 = math.rsqrt %21 : vector<16x1xf32>
    %23 = vector.broadcast %22 : vector<16x1xf32> to vector<16x32xf32>
    %24 = arith.mulf %14, %23 : vector<16x32xf32>
    %c0_12 = arith.constant 0 : index
    %c0_13 = arith.constant 0 : index
    %25 = vector.load %arg5[%c0_12, %c0_13] : memref<1x32xf32, #tpu.memory_space<vmem>>, vector<1x32xf32>
    %26 = vector.broadcast %25 : vector<1x32xf32> to vector<16x32xf32>
    %27 = arith.mulf %24, %26 : vector<16x32xf32>
    %c0_14 = arith.constant 0 : index
    %c0_15 = arith.constant 0 : index
    %28 = vector.load %arg6[%c0_14, %c0_15] : memref<1x32xf32, #tpu.memory_space<vmem>>, vector<1x32xf32>
    %29 = vector.broadcast %28 : vector<1x32xf32> to vector<16x32xf32>
    %30 = arith.addf %27, %29 : vector<16x32xf32>
    %c0_16 = arith.constant 0 : index
    %c0_17 = arith.constant 0 : index
    %31 = vector.load %arg7[%c0_16, %c0_17] : memref<16x32xf32, #tpu.memory_space<vmem>>, vector<16x32xf32>
    tpu.vector_store %arg7[%c0_16, %c0_17], %30 {strides = array<i32>} : memref<16x32xf32, #tpu.memory_space<vmem>>, vector<16x32xf32>,
    return
  }
  func.func @transform_0(%arg0: i32) -> (i32, i32) {
    %c0_i32 = arith.constant 0 : i32
    %c0_i32_0 = arith.constant 0 : i32
    return %arg0, %c0_i32 : i32, i32
  }
  func.func @transform_1(%arg0: i32) -> (i32, i32) {
    %c0_i32 = arith.constant 0 : i32
    %c0_i32_0 = arith.constant 0 : i32
    %c0_i32_1 = arith.constant 0 : i32
    return %c0_i32, %c0_i32_0 : i32, i32
  }
  func.func @transform_2(%arg0: i32) -> (i32, i32) {
    %c0_i32 = arith.constant 0 : i32
    %c0_i32_0 = arith.constant 0 : i32
    %c0_i32_1 = arith.constant 0 : i32
    return %c0_i32, %c0_i32_0 : i32, i32
  }
  func.func @transform_3(%arg0: i32) -> (i32, i32) {
    %c0_i32 = arith.constant 0 : i32
    %c0_i32_0 = arith.constant 0 : i32
    return %arg0, %c0_i32 : i32, i32
  }
  func.func @transform_4(%arg0: i32) -> (i32, i32) {
    %c0_i32 = arith.constant 0 : i32
    %c0_i32_0 = arith.constant 0 : i32
    %c0_i32_1 = arith.constant 0 : i32
    return %c0_i32, %c0_i32_0 : i32, i32
  }
  func.func @transform_5(%arg0: i32) -> (i32, i32) {
    %c0_i32 = arith.constant 0 : i32
    %c0_i32_0 = arith.constant 0 : i32
    %c0_i32_1 = arith.constant 0 : i32
    return %c0_i32, %c0_i32_0 : i32, i32
  }
  func.func @transform_6(%arg0: i32) -> (i32, i32) {
    %c0_i32 = arith.constant 0 : i32
    %c0_i32_0 = arith.constant 0 : i32
    return %arg0, %c0_i32 : i32, i32
  }
}

</mosaic_0001>

<bundles_post_ra>
// kernel: tpu_custom_call.1
= control target key start
LH: loop header
LB: loop body
LE: loop exit
PB: predicated region body
PF: predicated region fallthrough
CT: control target
= control target key end

     0   :  { %v289_v1 = vmov 0.0   ;;  %vm290_vm0 = vmmov 0   ;;  %s392_s0 = inlined_call_operand.vmem [shape: f32[16,128], index: 0, kind: input, shape index: {}]   ;;  %s393_s1 = inlined_call_operand.vmem [shape: bf16[128,32], index: 1, kind: input, shape index: {}]   ;;  %s394_s2 = inlined_call_operand.vmem [shape: f32[1,32], index: 2, kind: input, shape index: {}]   ;;  %s395_s3 = inlined_call_operand.vmem [shape: f32[16,32], index: 3, kind: input, shape index: {}]   ;;  %s396_s4 = inlined_call_operand.vmem [shape: f32[1,32], index: 4, kind: input, shape index: {}]   ;;  %s397_s5 = inlined_call_operand.vmem [shape: f32[1,32], index: 5, kind: input, shape index: {}]   ;;  %s398_s6 = inlined_call_operand.hbm [shape: f32[16,32], index: 6, kind: output, shape index: {}]  }
   0x1   :  { %v253_v0 = vld [vmem:[%s393_s1] sm:$0xff]   ;;  %228 = vmatprep.subr.bf16.mxu0 %v289_v1  ;;  %v254_v2 = vld [vmem:[%s393_s1 + $0x8] sm:$0xff]   ;;  %244 = vmatprep.mubr.msk.bf16.mxu0 %vm290_vm0, %v289_v1  ;;  %v255_v3 = vld [vmem:[%s393_s1 + $0x10] sm:$0xff]  }
   0x2   :  { %229 = vmatpush3.bf16.msra.mxu0 %v253_v0 }
   0x3   :  { %230 = vmatprep.subr.bf16.mxu0 %v289_v1 }
   0x6   :  { %231 = vmatpush3.bf16.msra.mxu0 %v254_v2 }
   0x7   :  { %232 = vmatprep.subr.bf16.mxu0 %v289_v1 }
   0x8   :  { %11 = vsyncpa [#allocation3], 0  ;;  %v256_v4 = vld [vmem:[%s393_s1 + $0x18] sm:$0xff]   ;;  %v257_v5 = vld [vmem:[%s393_s1 + $0x20] sm:$0xff]   ;;  %vm144_vm1 = vcmask 261120   ;;  %s291_s23 = smov [#allocation2]  }
   0x9   :  { %v258_v6 = vld [vmem:[%s393_s1 + $0x28] sm:$0xff]   ;;  %v259_v7 = vld [vmem:[%s393_s1 + $0x30] sm:$0xff]   ;;  %v260_v8 = vld [vmem:[%s393_s1 + $0x38] sm:$0xff]   ;;  %s197_s24 = sshll.u32 %s291_s23, 4  ;;  %s198_s24 = int_to_ptr.vmem [resolvable:$true] %s197_s24 }
   0xa   :  { %233 = vmatpush3.bf16.msra.mxu0 %v255_v3  ;;  %v25_v9 = vld [vmem:[%s392_s0] sm:$0xff]  ;;  %v26_v10 = vld [vmem:[%s392_s0 + $0x8] sm:$0xff]  ;;  %s265_s25 = scalar_lea.vmem %s198_s24, 256  ;;  %p270_p1 = scmp.lt.s32.totalorder %s198_s24, %s198_s24 }
   0xb   :  { %234 = vmatprep.subr.bf16.mxu0 %v289_v1  ;;  %v27_v11 = vpack.c.bf16 %v26_v10, %v25_v9  ;;  %v208_v12 = vld [vmem:[%s394_s2] ss:$0 sm:$0xff]  ;;  %v141_v18 = vld [vmem:[%s395_s3 + $0x8] sm:$0xff]  ;;  %p266_p0 = scmp.ne.s32.totalorder %s198_s24, %s265_s25  ;;  %p271_p2 = scmp.lt.s32.totalorder %s265_s25, %s265_s25 }
   0xc   :  { %v140_v14 = vld [vmem:[%s395_s3] sm:$0xff] }
   0xd   :  { %v217_v42 = vld [vmem:[%s396_s4] ss:$0 sm:$0xff]  ;;  %p272_p3 = por %p271_p2, %p270_p1 }
   0xe   :  { %235 = vmatpush3.bf16.msra.mxu0 %v256_v4  ;;  %v218_v44 = vld [vmem:[%s397_s5] ss:$0 sm:$0xff] }
   0xf   :  { %236 = vmatprep.subr.bf16.mxu0 %v289_v1  ;;  %p273_p4 = pnand %p272_p3, %p266_p0 }
  0x12   :  { %237 = vmatpush3.bf16.msra.mxu0 %v257_v5 }
  0x13   :  { %238 = vmatprep.subr.bf16.mxu0 %v289_v1 }
  0x16   :  { %239 = vmatpush3.bf16.msra.mxu0 %v258_v6 }
  0x17   :  { %240 = vmatprep.subr.bf16.mxu0 %v289_v1 }
  0x1a   :  { %241 = vmatpush3.bf16.msra.mxu0 %v259_v7 }
  0x1b   :  { %242 = vmatprep.subr.bf16.mxu0 %v289_v1 }
  0x1e   :  { %243 = vmatpush3.bf16.msra.mxu0 %v260_v8 }
  0x21   :  { %245 = vmatmul.mubr.bf16.vlgmr.msra.gmra.mrb[0].mxu0 %v27_v11 }
  0xf4   :  { %v133_v13 = vpop.f32.mrb[0].mxu0 }
  0xf5   :  { %v134_v15 = vadd.f32 %v208_v12, %v133_v13  ;;  %v246_v16 = vpop.f32.mrb[1].mxu0 }
  0xf6   :  { %v136_v17 = vpop.f32.mrb[2].mxu0 }
  0xf7   :  { %v137_v19 = vadd.f32 %v208_v12, %v136_v17  ;;  %v247_v20 = vpop.f32.mrb[3].mxu0  ;;  %v142_v21 = vadd.f32 %v140_v14, %v134_v15 }
  0xf9   :  { %v145_v22 = vsel %vm144_vm1, %v142_v21, 0.0  ;;  %v143_v23 = vadd.f32 %v141_v18, %v137_v19 }
  0xfa   :  { %146 = vadd.xlane.f32.xlu0 %v145_v22 }
  0xfb   :  { %v148_v24 = vsel %vm144_vm1, %v143_v23, 0.0 }
  0xfe   :  { %149 = vadd.xlane.f32.xlu0 %v148_v24 }
 0x187   :  { %v147_v25 = vpop.xlane.xlu0 %146 }
 0x188   :  { %v152_v26 = vmul.f32 0.03125, %v147_v25 }
 0x18a   :  { %v154_v27 = vsub.f32 %v142_v21, %v152_v26 }
 0x18b   :  { %v150_v28 = vpop.xlane.xlu0 %149 }
 0x18c   :  { %v153_v29 = vmul.f32 0.03125, %v150_v28  ;;  %v156_v30 = vmul.f32 %v154_v27, %v154_v27 }
 0x18e   :  { %v155_v31 = vsub.f32 %v143_v23, %v153_v29  ;;  %v158_v32 = vsel %vm144_vm1, %v156_v30, 0.0 }
 0x18f   :  { %159 = vadd.xlane.f32.xlu1 %v158_v32 }
 0x190   :  { %v157_v33 = vmul.f32 %v155_v31, %v155_v31 }
 0x192   :  { %v161_v34 = vsel %vm144_vm1, %v157_v33, 0.0 }
 0x193   :  { %162 = vadd.xlane.f32.xlu1 %v161_v34 }
 0x21c   :  { %v160_v35 = vpop.xlane.xlu1 %159 }
 0x21d   :  { %v164_v36 = vmul.f32 0.03125, %v160_v35 }
 0x21f   :  { %v166_v37 = vadd.f32 1e-12, %v164_v36 }
 0x220   :  { %v163_v38 = vpop.xlane.xlu1 %162 }
 0x221   :  { %261 = vrsqrt.f32 %v166_v37  ;;  %v165_v39 = vmul.f32 0.03125, %v163_v38 }
 0x223   :  { %v167_v40 = vadd.f32 1e-12, %v165_v39 }
 0x225   :  { %263 = vrsqrt.f32 %v167_v40 }
 0x22b   :  { %v262_v41 = vpop.eup %261 }
 0x22c   :  { %v170_v43 = vmul.f32 %v262_v41, %v154_v27 }
 0x22e   :  { %v179_v45 = vmul.f32 %v217_v42, %v170_v43 }
 0x22f   :  { %v264_v46 = vpop.eup %263 }
 0x230   :  { %v171_v47 = vmul.f32 %v264_v46, %v155_v31  ;;  %v188_v48 = vadd.f32 %v218_v44, %v179_v45 }
 0x232   :  { %v180_v49 = vmul.f32 %v217_v42, %v171_v47  ;;  %190 = vst.msk [vmem:[#allocation2] sm:$0xff] %vm144_vm1, %v188_v48 }
 0x234   :  { %v189_v50 = vadd.f32 %v218_v44, %v180_v49 }
 0x236   :  { %191 = vst.msk [vmem:[#allocation2 + $0x8] sm:$0xff] %vm144_vm1, %v189_v50 }
 0x237   :  { %276 = shalt.err (!%p273_p4)
}
 0x238   :  { %s277_s26 = scalar_lea.hbm %s398_s6, 256 }
 0x239   :  { %p278_p5 = scmp.ne.s32.totalorder %s398_s6, %s277_s26  ;;  %p281_p6 = scmp.lt.u32.totalorder %s277_s26, %s398_s6 }
 0x23b   :  { %p283_p7 = pnand %p281_p6, %p278_p5 }
 0x23d   :  { %286 = shalt.err (!%p283_p7)
}
 0x23e   :  { %s292_s7 = smov 128   ;;  %s293_s8 = smov 8  }
 0x23f   :  { %203 = dma.vmem_to_hbm [thread:$0]  %s198_s24, 256, %s398_s6, [#allocation3], %s292_s7, %s292_s7, %s293_s8  }
 0x240   :  { %287 = dma.done.wait [#allocation3], 256  }
 0x241   :  { %288 = vsyncadd [#allocation3], 4294967040 }
 0x242   :  { %207 = vsyncpa [#allocation3], 1 }

</bundles_post_ra>
